<compile_context>
chip_gen: v5e
topology: v5e:2x2
jax: 0.10.0
libtpu: 0.0.40
codegen_flags: <defaults>
</compile_context>

<pallas_src>
import functools

import jax
import jax.numpy as jnp
from jax.experimental import pallas as pl
from jax.experimental.pallas import tpu as pltpu


# ------------------------------- fused kernel -------------------------------- #

def gat_forward_kernel(
    x_ref, adj_ref,
    mw1_ref, mb1_ref, mw2_ref, mb2_ref,        # initial_mlp (BN folded into Linear)
    g0w_ref, g0att_ref, g0b_ref,               # GAT layer 0
    g1w_ref, g1att_ref, g1b_ref,               # GAT layer 1
    pool_ref, fs_ref, ft_ref,                  # mean-pool matrix + eval-BN affine
    fw1_ref, fb1_ref, fw2_ref, fb2_ref,        # final linears
    o_ref, *, heads, out_chs):
    # ---- initial MLP: (Linear+BN folded) -> ReLU, twice. Dropout = id (eval). ----
    h = jnp.dot(x_ref[...], mw1_ref[...], preferred_element_type=jnp.float32) + mb1_ref[...]
    h = jnp.maximum(h, 0.0)
    h = jnp.dot(h, mw2_ref[...], preferred_element_type=jnp.float32) + mb2_ref[...]
    h = jnp.maximum(h, 0.0)
    # TODO(synk): Dropout(p) is identity in eval mode; no stochastic mask applied.

    adj = adj_ref[...]                # [N, N], adj[i, j] = 1 iff edge j -> i (self loops added)
    edge = adj > 0.0                  # computed once, reused by both layers
    neg_big = jnp.float32(-1e30)

    def gat_layer(h_in, w_ref, att_ref, b_ref, C):
        # h_in [N, Cin] -> hw [N, heads*C]
        hw = jnp.dot(h_in, w_ref[...], preferred_element_type=jnp.float32)
        # One MXU matmul gives all per-head logit projections:
        #   scores[:, k]          = a_src for head k
        #   scores[:, heads + k]  = a_dst for head k
        scores = jnp.dot(hw, att_ref[...], preferred_element_type=jnp.float32)  # [N, 2*heads]
        outs = []
        for k in range(heads):
            hk = hw[:, k * C:(k + 1) * C]                       # [N, C]
            a_src = scores[:, k:k + 1]                          # [N, 1]
            a_dst = scores[:, heads + k:heads + k + 1]          # [N, 1]
            e = a_dst + a_src.T                                 # e[i, j] = a_dst[i] + a_src[j]
            e = jnp.maximum(e, 0.2 * e)                         # LeakyReLU(0.2), no select
            e = jnp.where(edge, e, neg_big)                     # mask non-edges (single pass)
            m = jnp.max(e, axis=-1, keepdims=True)
            p = jnp.exp(e - m)                                  # masked entries underflow to 0
            denom = jnp.sum(p, axis=-1, keepdims=True)          # > 0 thanks to self loops
            alpha = p * pl.reciprocal(denom, approx=True)       # EUP vrcp
            # TODO(synk): attention dropout (p=0.2) is identity in eval mode.
            outs.append(jnp.dot(alpha, hk, preferred_element_type=jnp.float32))
        return jnp.concatenate(outs, axis=-1) + b_ref[...]      # [N, heads*C]

    h = gat_layer(h, g0w_ref, g0att_ref, g0b_ref, out_chs[0])
    h = gat_layer(h, g1w_ref, g1att_ref, g1b_ref, out_chs[1])

    # ---- global mean pool (matmul) -> BN(eval) -> ReLU -> Linear -> ReLU -> Linear ----
    pooled = jnp.dot(pool_ref[...], h, preferred_element_type=jnp.float32)       # [G, D]
    z = pooled * fs_ref[...] + ft_ref[...]
    z = jnp.maximum(z, 0.0)
    z = jnp.dot(z, fw1_ref[...], preferred_element_type=jnp.float32) + fb1_ref[...]
    z = jnp.maximum(z, 0.0)
    z = jnp.dot(z, fw2_ref[...], preferred_element_type=jnp.float32) + fb2_ref[...]
    # TODO(synk): final Dropout is identity in eval mode.
    o_ref[...] = z


# ------------------------------ parameters ---------------------------------- #

def init_params(key, num_features, num_classes, emb_sizes, heads=2):
    H0 = emb_sizes[0]
    ks = iter(jax.random.split(key, 64))

    def lin(fan_in, fan_out):
        w = jax.random.normal(next(ks), (fan_in, fan_out), jnp.float32) / jnp.sqrt(fan_in)
        b = 0.01 * jax.random.normal(next(ks), (1, fan_out), jnp.float32)
        return w, b

    def bn(dim, eps=1e-5):
        gamma = 1.0 + 0.05 * jax.random.normal(next(ks), (1, dim), jnp.float32)
        beta = 0.05 * jax.random.normal(next(ks), (1, dim), jnp.float32)
        running_mean = jnp.zeros((1, dim), jnp.float32)
        running_var = jnp.ones((1, dim), jnp.float32)
        scale = gamma / jnp.sqrt(running_var + eps)
        shift = beta - running_mean * scale
        return scale, shift

    params = {}
    # initial_mlp: Linear -> BN -> ReLU -> Linear -> BN -> ReLU (BN folded into Linear).
    w1, b1 = lin(num_features, H0)
    s1, t1 = bn(H0)
    w2, b2 = lin(H0, H0)
    s2, t2 = bn(H0)
    params["initial_mlp"] = dict(w1=w1 * s1, b1=b1 * s1 + t1,
                                 w2=w2 * s2, b2=b2 * s2 + t2)

    gat_layers = []
    for i in range(len(emb_sizes) - 1):
        cin, cout = emb_sizes[i], emb_sizes[i + 1]
        C = cout // heads
        w = jax.random.normal(next(ks), (cin, heads * C), jnp.float32) / jnp.sqrt(cin)
        att_src = 0.1 * jax.random.normal(next(ks), (heads, C), jnp.float32)
        att_dst = 0.1 * jax.random.normal(next(ks), (heads, C), jnp.float32)
        bias = 0.01 * jax.random.normal(next(ks), (1, heads * C), jnp.float32)
        # Block-diagonal projection so one matmul gives every head's a_src / a_dst:
        # columns [0..heads-1] = att_src per head, [heads..2*heads-1] = att_dst per head.
        att_mat = jnp.zeros((heads * C, 2 * heads), jnp.float32)
        for k in range(heads):
            att_mat = att_mat.at[k * C:(k + 1) * C, k].set(att_src[k])
            att_mat = att_mat.at[k * C:(k + 1) * C, heads + k].set(att_dst[k])
        gat_layers.append(dict(w=w, att=att_mat, bias=bias))
    params["gat"] = gat_layers

    # initial_lin: BN -> ReLU -> Linear -> ReLU -> Linear (BN kept as affine on [G, D]).
    s, t = bn(H0)
    fw1, fb1 = lin(H0, H0)
    fw2, fb2 = lin(H0, num_classes)
    params["final"] = dict(s=s, t=t, w1=fw1, b1=fb1, w2=fw2, b2=fb2)
    return params


# ------------------------------ model forward -------------------------------- #

def gat_forward(params, x, edge_index, edge_weights, batch, num_graphs, emb_sizes, heads=2):
    N = x.shape[0]
    # edges = edge_index.T[edge_weights == 1].T  -> dense adjacency adj[dst, src],
    # built with one-hot matmuls (MXU) instead of an XLA scatter.
    keep = (edge_weights == 1).astype(jnp.float32)
    node_ids = jnp.arange(N, dtype=jnp.int32)
    oh_dst = (edge_index[1][None, :] == node_ids[:, None]).astype(jnp.float32)   # [N, E]
    oh_src = (edge_index[0][:, None] == node_ids[None, :]).astype(jnp.float32)   # [E, N]
    adj = jnp.dot(oh_dst * keep[None, :], oh_src)                                # kept-edge counts
    adj = jnp.where(adj > 0.0, 1.0, 0.0)                                         # dedup parallel edges
    adj = jnp.maximum(adj, jnp.eye(N, dtype=jnp.float32))                        # add_self_loops=True

    # global mean pooling matrix (pool == 'mean')
    onehot = (batch[None, :] == jnp.arange(num_graphs)[:, None]).astype(jnp.float32)
    counts = jnp.maximum(onehot.sum(axis=1, keepdims=True), 1.0)
    pool_mat = onehot / counts

    mlp = params["initial_mlp"]
    g0, g1 = params["gat"]
    fin = params["final"]
    out_chs = (emb_sizes[1] // heads, emb_sizes[2] // heads)
    num_classes = fin["w2"].shape[1]

    args = (x, adj,
            mlp["w1"], mlp["b1"], mlp["w2"], mlp["b2"],
            g0["w"], g0["att"], g0["bias"],
            g1["w"], g1["att"], g1["bias"],
            pool_mat, fin["s"], fin["t"],
            fin["w1"], fin["b1"], fin["w2"], fin["b2"])

    return pl.pallas_call(
        functools.partial(gat_forward_kernel, heads=heads, out_chs=out_chs),
        out_shape=jax.ShapeDtypeStruct((num_graphs, num_classes), jnp.float32),
        in_specs=[pl.BlockSpec(memory_space=pltpu.MemorySpace.VMEM)] * len(args),
        out_specs=pl.BlockSpec(memory_space=pltpu.MemorySpace.VMEM),
    )(*args)


# ---------------------------------- main ------------------------------------- #

if __name__ == "__main__":
    key = jax.random.PRNGKey(0)
    num_features = 8
    num_classes = 3
    emb_sizes = [32, 64, 32]   # emb_sizes[-1] must equal emb_sizes[0] (see note above)
    N = 16                     # total nodes
    G = 2                      # graphs in the batch
    E = 40                     # candidate edges

    ks = jax.random.split(key, 8)
    x = jax.random.normal(ks[0], (N, num_features), jnp.float32)
    batch = jnp.concatenate([jnp.zeros(N // 2, jnp.int32),
                             jnp.ones(N - N // 2, jnp.int32)])

    # random directed edges kept inside each graph
    src0 = jax.random.randint(ks[1], (E // 2,), 0, N // 2)
    dst0 = jax.random.randint(ks[2], (E // 2,), 0, N // 2)
    src1 = jax.random.randint(ks[3], (E // 2,), N // 2, N)
    dst1 = jax.random.randint(ks[4], (E // 2,), N // 2, N)
    edge_index = jnp.stack([jnp.concatenate([src0, src1]),
                            jnp.concatenate([dst0, dst1])]).astype(jnp.int32)  # [2, E]
    edge_weights = (jax.random.uniform(ks[5], (E,)) > 0.3).astype(jnp.float32)

    params = init_params(ks[6], num_features, num_classes, emb_sizes)

    out = gat_forward(params, x, edge_index, edge_weights, batch, G, emb_sizes)
    out = jax.block_until_ready(out)
    assert out.shape == (G, num_classes)
    assert jnp.all(jnp.isfinite(out))
    print("KERNEL_OK")
</pallas_src>

<mosaic_0001>
module attributes {stable_mosaic.version = 11 : i64} {
  func.func @gat_forward_kernel(%arg0: memref<16x8xf32, #tpu.memory_space<vmem>>, %arg1: memref<16x16xf32, #tpu.memory_space<vmem>>, %arg2: memref<8x32xf32, #tpu.memory_space<vmem>>, %arg3: memref<1x32xf32, #tpu.memory_space<vmem>>, %arg4: memref<32x32xf32, #tpu.memory_space<vmem>>, %arg5: memref<1x32xf32, #tpu.memory_space<vmem>>, %arg6: memref<32x64xf32, #tpu.memory_space<vmem>>, %arg7: memref<64x4xf32, #tpu.memory_space<vmem>>, %arg8: memref<1x64xf32, #tpu.memory_space<vmem>>, %arg9: memref<64x32xf32, #tpu.memory_space<vmem>>, %arg10: memref<32x4xf32, #tpu.memory_space<vmem>>, %arg11: memref<1x32xf32, #tpu.memory_space<vmem>>, %arg12: memref<2x16xf32, #tpu.memory_space<vmem>>, %arg13: memref<1x32xf32, #tpu.memory_space<vmem>>, %arg14: memref<1x32xf32, #tpu.memory_space<vmem>>, %arg15: memref<32x32xf32, #tpu.memory_space<vmem>>, %arg16: memref<1x32xf32, #tpu.memory_space<vmem>>, %arg17: memref<32x3xf32, #tpu.memory_space<vmem>>, %arg18: memref<1x3xf32, #tpu.memory_space<vmem>>, %arg19: memref<2x3xf32, #tpu.memory_space<vmem>>) attributes {dimension_semantics = [], scalar_prefetch = 0 : i64, scratch_operands = 0 : i64, tpu.core_type = #tpu.core_type<tc>} {
    %c0 = arith.constant 0 : index
    %c0_0 = arith.constant 0 : index
    %0 = vector.load %arg0[%c0, %c0_0] : memref<16x8xf32, #tpu.memory_space<vmem>>, vector<16x8xf32>
    %c0_1 = arith.constant 0 : index
    %c0_2 = arith.constant 0 : index
    %1 = vector.load %arg2[%c0_1, %c0_2] : memref<8x32xf32, #tpu.memory_space<vmem>>, vector<8x32xf32>
    %cst = arith.constant dense<0.000000e+00> : vector<16x32xf32>
    %2 = tpu.matmul %0, %1, %cst {dimension_numbers = #tpu.dot_dimension_numbers<[1], [0], [0], [1], [0, 0, 1, 1], [], []>} : vector<16x8xf32>, vector<8x32xf32>, vector<16x32xf32> -> vector<16x32xf32>
    %c0_3 = arith.constant 0 : index
    %c0_4 = arith.constant 0 : index
    %3 = vector.load %arg3[%c0_3, %c0_4] : memref<1x32xf32, #tpu.memory_space<vmem>>, vector<1x32xf32>
    %4 = vector.broadcast %3 : vector<1x32xf32> to vector<16x32xf32>
    %5 = arith.addf %2, %4 : vector<16x32xf32>
    %cst_5 = arith.constant 0.000000e+00 : f32
    %6 = vector.broadcast %cst_5 : f32 to vector<16x32xf32>
    %7 = arith.maximumf %5, %6 : vector<16x32xf32>
    %c0_6 = arith.constant 0 : index
    %c0_7 = arith.constant 0 : index
    %8 = vector.load %arg4[%c0_6, %c0_7] : memref<32x32xf32, #tpu.memory_space<vmem>>, vector<32x32xf32>
    %cst_8 = arith.constant dense<0.000000e+00> : vector<16x32xf32>
    %9 = tpu.matmul %7, %8, %cst_8 {dimension_numbers = #tpu.dot_dimension_numbers<[1], [0], [0], [1], [0, 0, 1, 1], [], []>} : vector<16x32xf32>, vector<32x32xf32>, vector<16x32xf32> -> vector<16x32xf32>
    %c0_9 = arith.constant 0 : index
    %c0_10 = arith.constant 0 : index
    %10 = vector.load %arg5[%c0_9, %c0_10] : memref<1x32xf32, #tpu.memory_space<vmem>>, vector<1x32xf32>
    %11 = vector.broadcast %10 : vector<1x32xf32> to vector<16x32xf32>
    %12 = arith.addf %9, %11 : vector<16x32xf32>
    %cst_11 = arith.constant 0.000000e+00 : f32
    %13 = vector.broadcast %cst_11 : f32 to vector<16x32xf32>
    %14 = arith.maximumf %12, %13 : vector<16x32xf32>
    %c0_12 = arith.constant 0 : index
    %c0_13 = arith.constant 0 : index
    %15 = vector.load %arg1[%c0_12, %c0_13] : memref<16x16xf32, #tpu.memory_space<vmem>>, vector<16x16xf32>
    %cst_14 = arith.constant 0.000000e+00 : f32
    %16 = vector.broadcast %cst_14 : f32 to vector<16x16xf32>
    %17 = arith.cmpf ogt, %15, %16 : vector<16x16xf32>
    %c0_15 = arith.constant 0 : index
    %c0_16 = arith.constant 0 : index
    %18 = vector.load %arg6[%c0_15, %c0_16] : memref<32x64xf32, #tpu.memory_space<vmem>>, vector<32x64xf32>
    %cst_17 = arith.constant dense<0.000000e+00> : vector<16x64xf32>
    %19 = tpu.matmul %14, %18, %cst_17 {dimension_numbers = #tpu.dot_dimension_numbers<[1], [0], [0], [1], [0, 0, 1, 1], [], []>} : vector<16x32xf32>, vector<32x64xf32>, vector<16x64xf32> -> vector<16x64xf32>
    %c0_18 = arith.constant 0 : index
    %c0_19 = arith.constant 0 : index
    %20 = vector.load %arg7[%c0_18, %c0_19] : memref<64x4xf32, #tpu.memory_space<vmem>>, vector<64x4xf32>
    %cst_20 = arith.constant dense<0.000000e+00> : vector<16x4xf32>
    %21 = tpu.matmul %19, %20, %cst_20 {dimension_numbers = #tpu.dot_dimension_numbers<[1], [0], [0], [1], [0, 0, 1, 1], [], []>} : vector<16x64xf32>, vector<64x4xf32>, vector<16x4xf32> -> vector<16x4xf32>
    %22 = vector.extract_strided_slice %19 {offsets = [0, 0], sizes = [16, 32], strides = [1, 1]} : vector<16x64xf32> to vector<16x32xf32>
    %23 = vector.extract_strided_slice %21 {offsets = [0, 0], sizes = [16, 1], strides = [1, 1]} : vector<16x4xf32> to vector<16x1xf32>
    %24 = vector.extract_strided_slice %21 {offsets = [0, 2], sizes = [16, 1], strides = [1, 1]} : vector<16x4xf32> to vector<16x1xf32>
    %25 = tpu.transpose %23, [1, 0] : vector<16x1xf32> -> vector<1x16xf32>
    %26 = vector.broadcast %24 : vector<16x1xf32> to vector<16x16xf32>
    %27 = vector.broadcast %25 : vector<1x16xf32> to vector<16x16xf32>
    %28 = arith.addf %26, %27 : vector<16x16xf32>
    %cst_21 = arith.constant 2.000000e-01 : f32
    %29 = vector.broadcast %cst_21 : f32 to vector<16x16xf32>
    %30 = arith.mulf %29, %28 : vector<16x16xf32>
    %31 = arith.maximumf %28, %30 : vector<16x16xf32>
    %cst_22 = arith.constant -1.000000e+30 : f32
    %32 = vector.broadcast %cst_22 : f32 to vector<16x16xf32>
    %33 = arith.select %17, %31, %32 : vector<16x16xi1>, vector<16x16xf32>
    %cst_23 = arith.constant dense<0xFF800000> : vector<16xf32>
    %34 = vector.multi_reduction <maximumf>, %33, %cst_23 [1] : vector<16x16xf32> to vector<16xf32>
    %35 = vector.shape_cast %34 : vector<16xf32> to vector<16x1xf32>
    %36 = vector.broadcast %35 : vector<16x1xf32> to vector<16x16xf32>
    %37 = arith.subf %33, %36 : vector<16x16xf32>
    %38 = math.exp %37 : vector<16x16xf32>
    %cst_24 = arith.constant dense<0.000000e+00> : vector<16xf32>
    %39 = vector.multi_reduction <add>, %38, %cst_24 [1] : vector<16x16xf32> to vector<16xf32>
    %40 = vector.shape_cast %39 : vector<16xf32> to vector<16x1xf32>
    %41 = tpu.reciprocal %40 {approx = true} : vector<16x1xf32> -> vector<16x1xf32>
    %42 = vector.broadcast %41 : vector<16x1xf32> to vector<16x16xf32>
    %43 = arith.mulf %38, %42 : vector<16x16xf32>
    %cst_25 = arith.constant dense<0.000000e+00> : vector<16x32xf32>
    %44 = tpu.matmul %43, %22, %cst_25 {dimension_numbers = #tpu.dot_dimension_numbers<[1], [0], [0], [1], [0, 0, 1, 1], [], []>} : vector<16x16xf32>, vector<16x32xf32>, vector<16x32xf32> -> vector<16x32xf32>
    %45 = vector.extract_strided_slice %19 {offsets = [0, 32], sizes = [16, 32], strides = [1, 1]} : vector<16x64xf32> to vector<16x32xf32>
    %46 = vector.extract_strided_slice %21 {offsets = [0, 1], sizes = [16, 1], strides = [1, 1]} : vector<16x4xf32> to vector<16x1xf32>
    %47 = vector.extract_strided_slice %21 {offsets = [0, 3], sizes = [16, 1], strides = [1, 1]} : vector<16x4xf32> to vector<16x1xf32>
    %48 = tpu.transpose %46, [1, 0] : vector<16x1xf32> -> vector<1x16xf32>
    %49 = vector.broadcast %47 : vector<16x1xf32> to vector<16x16xf32>
    %50 = vector.broadcast %48 : vector<1x16xf32> to vector<16x16xf32>
    %51 = arith.addf %49, %50 : vector<16x16xf32>
    %cst_26 = arith.constant 2.000000e-01 : f32
    %52 = vector.broadcast %cst_26 : f32 to vector<16x16xf32>
    %53 = arith.mulf %52, %51 : vector<16x16xf32>
    %54 = arith.maximumf %51, %53 : vector<16x16xf32>
    %cst_27 = arith.constant -1.000000e+30 : f32
    %55 = vector.broadcast %cst_27 : f32 to vector<16x16xf32>
    %56 = arith.select %17, %54, %55 : vector<16x16xi1>, vector<16x16xf32>
    %cst_28 = arith.constant dense<0xFF800000> : vector<16xf32>
    %57 = vector.multi_reduction <maximumf>, %56, %cst_28 [1] : vector<16x16xf32> to vector<16xf32>
    %58 = vector.shape_cast %57 : vector<16xf32> to vector<16x1xf32>
    %59 = vector.broadcast %58 : vector<16x1xf32> to vector<16x16xf32>
    %60 = arith.subf %56, %59 : vector<16x16xf32>
    %61 = math.exp %60 : vector<16x16xf32>
    %cst_29 = arith.constant dense<0.000000e+00> : vector<16xf32>
    %62 = vector.multi_reduction <add>, %61, %cst_29 [1] : vector<16x16xf32> to vector<16xf32>
    %63 = vector.shape_cast %62 : vector<16xf32> to vector<16x1xf32>
    %64 = tpu.reciprocal %63 {approx = true} : vector<16x1xf32> -> vector<16x1xf32>
    %65 = vector.broadcast %64 : vector<16x1xf32> to vector<16x16xf32>
    %66 = arith.mulf %61, %65 : vector<16x16xf32>
    %cst_30 = arith.constant dense<0.000000e+00> : vector<16x32xf32>
    %67 = tpu.matmul %66, %45, %cst_30 {dimension_numbers = #tpu.dot_dimension_numbers<[1], [0], [0], [1], [0, 0, 1, 1], [], []>} : vector<16x16xf32>, vector<16x32xf32>, vector<16x32xf32> -> vector<16x32xf32>
    %68 = tpu.concatenate %44, %67 in 1 : vector<16x32xf32>, vector<16x32xf32> -> vector<16x64xf32>
    %c0_31 = arith.constant 0 : index
    %c0_32 = arith.constant 0 : index
    %69 = vector.load %arg8[%c0_31, %c0_32] : memref<1x64xf32, #tpu.memory_space<vmem>>, vector<1x64xf32>
    %70 = vector.broadcast %69 : vector<1x64xf32> to vector<16x64xf32>
    %71 = arith.addf %68, %70 : vector<16x64xf32>
    %c0_33 = arith.constant 0 : index
    %c0_34 = arith.constant 0 : index
    %72 = vector.load %arg9[%c0_33, %c0_34] : memref<64x32xf32, #tpu.memory_space<vmem>>, vector<64x32xf32>
    %cst_35 = arith.constant dense<0.000000e+00> : vector<16x32xf32>
    %73 = tpu.matmul %71, %72, %cst_35 {dimension_numbers = #tpu.dot_dimension_numbers<[1], [0], [0], [1], [0, 0, 1, 1], [], []>} : vector<16x64xf32>, vector<64x32xf32>, vector<16x32xf32> -> vector<16x32xf32>
    %c0_36 = arith.constant 0 : index
    %c0_37 = arith.constant 0 : index
    %74 = vector.load %arg10[%c0_36, %c0_37] : memref<32x4xf32, #tpu.memory_space<vmem>>, vector<32x4xf32>
    %cst_38 = arith.constant dense<0.000000e+00> : vector<16x4xf32>
    %75 = tpu.matmul %73, %74, %cst_38 {dimension_numbers = #tpu.dot_dimension_numbers<[1], [0], [0], [1], [0, 0, 1, 1], [], []>} : vector<16x32xf32>, vector<32x4xf32>, vector<16x4xf32> -> vector<16x4xf32>
    %76 = vector.extract_strided_slice %73 {offsets = [0, 0], sizes = [16, 16], strides = [1, 1]} : vector<16x32xf32> to vector<16x16xf32>
    %77 = vector.extract_strided_slice %75 {offsets = [0, 0], sizes = [16, 1], strides = [1, 1]} : vector<16x4xf32> to vector<16x1xf32>
    %78 = vector.extract_strided_slice %75 {offsets = [0, 2], sizes = [16, 1], strides = [1, 1]} : vector<16x4xf32> to vector<16x1xf32>
    %79 = tpu.transpose %77, [1, 0] : vector<16x1xf32> -> vector<1x16xf32>
    %80 = vector.broadcast %78 : vector<16x1xf32> to vector<16x16xf32>
    %81 = vector.broadcast %79 : vector<1x16xf32> to vector<16x16xf32>
    %82 = arith.addf %80, %81 : vector<16x16xf32>
    %cst_39 = arith.constant 2.000000e-01 : f32
    %83 = vector.broadcast %cst_39 : f32 to vector<16x16xf32>
    %84 = arith.mulf %83, %82 : vector<16x16xf32>
    %85 = arith.maximumf %82, %84 : vector<16x16xf32>
    %cst_40 = arith.constant -1.000000e+30 : f32
    %86 = vector.broadcast %cst_40 : f32 to vector<16x16xf32>
    %87 = arith.select %17, %85, %86 : vector<16x16xi1>, vector<16x16xf32>
    %cst_41 = arith.constant dense<0xFF800000> : vector<16xf32>
    %88 = vector.multi_reduction <maximumf>, %87, %cst_41 [1] : vector<16x16xf32> to vector<16xf32>
    %89 = vector.shape_cast %88 : vector<16xf32> to vector<16x1xf32>
    %90 = vector.broadcast %89 : vector<16x1xf32> to vector<16x16xf32>
    %91 = arith.subf %87, %90 : vector<16x16xf32>
    %92 = math.exp %91 : vector<16x16xf32>
    %cst_42 = arith.constant dense<0.000000e+00> : vector<16xf32>
    %93 = vector.multi_reduction <add>, %92, %cst_42 [1] : vector<16x16xf32> to vector<16xf32>
    %94 = vector.shape_cast %93 : vector<16xf32> to vector<16x1xf32>
    %95 = tpu.reciprocal %94 {approx = true} : vector<16x1xf32> -> vector<16x1xf32>
    %96 = vector.broadcast %95 : vector<16x1xf32> to vector<16x16xf32>
    %97 = arith.mulf %92, %96 : vector<16x16xf32>
    %cst_43 = arith.constant dense<0.000000e+00> : vector<16x16xf32>
    %98 = tpu.matmul %97, %76, %cst_43 {dimension_numbers = #tpu.dot_dimension_numbers<[1], [0], [0], [1], [0, 0, 1, 1], [], []>} : vector<16x16xf32>, vector<16x16xf32>, vector<16x16xf32> -> vector<16x16xf32>
    %99 = vector.extract_strided_slice %73 {offsets = [0, 16], sizes = [16, 16], strides = [1, 1]} : vector<16x32xf32> to vector<16x16xf32>
    %100 = vector.extract_strided_slice %75 {offsets = [0, 1], sizes = [16, 1], strides = [1, 1]} : vector<16x4xf32> to vector<16x1xf32>
    %101 = vector.extract_strided_slice %75 {offsets = [0, 3], sizes = [16, 1], strides = [1, 1]} : vector<16x4xf32> to vector<16x1xf32>
    %102 = tpu.transpose %100, [1, 0] : vector<16x1xf32> -> vector<1x16xf32>
    %103 = vector.broadcast %101 : vector<16x1xf32> to vector<16x16xf32>
    %104 = vector.broadcast %102 : vector<1x16xf32> to vector<16x16xf32>
    %105 = arith.addf %103, %104 : vector<16x16xf32>
    %cst_44 = arith.constant 2.000000e-01 : f32
    %106 = vector.broadcast %cst_44 : f32 to vector<16x16xf32>
    %107 = arith.mulf %106, %105 : vector<16x16xf32>
    %108 = arith.maximumf %105, %107 : vector<16x16xf32>
    %cst_45 = arith.constant -1.000000e+30 : f32
    %109 = vector.broadcast %cst_45 : f32 to vector<16x16xf32>
    %110 = arith.select %17, %108, %109 : vector<16x16xi1>, vector<16x16xf32>
    %cst_46 = arith.constant dense<0xFF800000> : vector<16xf32>
    %111 = vector.multi_reduction <maximumf>, %110, %cst_46 [1] : vector<16x16xf32> to vector<16xf32>
    %112 = vector.shape_cast %111 : vector<16xf32> to vector<16x1xf32>
    %113 = vector.broadcast %112 : vector<16x1xf32> to vector<16x16xf32>
    %114 = arith.subf %110, %113 : vector<16x16xf32>
    %115 = math.exp %114 : vector<16x16xf32>
    %cst_47 = arith.constant dense<0.000000e+00> : vector<16xf32>
    %116 = vector.multi_reduction <add>, %115, %cst_47 [1] : vector<16x16xf32> to vector<16xf32>
    %117 = vector.shape_cast %116 : vector<16xf32> to vector<16x1xf32>
    %118 = tpu.reciprocal %117 {approx = true} : vector<16x1xf32> -> vector<16x1xf32>
    %119 = vector.broadcast %118 : vector<16x1xf32> to vector<16x16xf32>
    %120 = arith.mulf %115, %119 : vector<16x16xf32>
    %cst_48 = arith.constant dense<0.000000e+00> : vector<16x16xf32>
    %121 = tpu.matmul %120, %99, %cst_48 {dimension_numbers = #tpu.dot_dimension_numbers<[1], [0], [0], [1], [0, 0, 1, 1], [], []>} : vector<16x16xf32>, vector<16x16xf32>, vector<16x16xf32> -> vector<16x16xf32>
    %122 = tpu.concatenate %98, %121 in 1 : vector<16x16xf32>, vector<16x16xf32> -> vector<16x32xf32>
    %c0_49 = arith.constant 0 : index
    %c0_50 = arith.constant 0 : index
    %123 = vector.load %arg11[%c0_49, %c0_50] : memref<1x32xf32, #tpu.memory_space<vmem>>, vector<1x32xf32>
    %124 = vector.broadcast %123 : vector<1x32xf32> to vector<16x32xf32>
    %125 = arith.addf %122, %124 : vector<16x32xf32>
    %c0_51 = arith.constant 0 : index
    %c0_52 = arith.constant 0 : index
    %126 = vector.load %arg12[%c0_51, %c0_52] : memref<2x16xf32, #tpu.memory_space<vmem>>, vector<2x16xf32>
    %cst_53 = arith.constant dense<0.000000e+00> : vector<2x32xf32>
    %127 = tpu.matmul %126, %125, %cst_53 {dimension_numbers = #tpu.dot_dimension_numbers<[1], [0], [0], [1], [0, 0, 1, 1], [], []>} : vector<2x16xf32>, vector<16x32xf32>, vector<2x32xf32> -> vector<2x32xf32>
    %c0_54 = arith.constant 0 : index
    %c0_55 = arith.constant 0 : index
    %128 = vector.load %arg13[%c0_54, %c0_55] : memref<1x32xf32, #tpu.memory_space<vmem>>, vector<1x32xf32>
    %129 = vector.broadcast %128 : vector<1x32xf32> to vector<2x32xf32>
    %130 = arith.mulf %127, %129 : vector<2x32xf32>
    %c0_56 = arith.constant 0 : index
    %c0_57 = arith.constant 0 : index
    %131 = vector.load %arg14[%c0_56, %c0_57] : memref<1x32xf32, #tpu.memory_space<vmem>>, vector<1x32xf32>
    %132 = vector.broadcast %131 : vector<1x32xf32> to vector<2x32xf32>
    %133 = arith.addf %130, %132 : vector<2x32xf32>
    %cst_58 = arith.constant 0.000000e+00 : f32
    %134 = vector.broadcast %cst_58 : f32 to vector<2x32xf32>
    %135 = arith.maximumf %133, %134 : vector<2x32xf32>
    %c0_59 = arith.constant 0 : index
    %c0_60 = arith.constant 0 : index
    %136 = vector.load %arg15[%c0_59, %c0_60] : memref<32x32xf32, #tpu.memory_space<vmem>>, vector<32x32xf32>
    %cst_61 = arith.constant dense<0.000000e+00> : vector<2x32xf32>
    %137 = tpu.matmul %135, %136, %cst_61 {dimension_numbers = #tpu.dot_dimension_numbers<[1], [0], [0], [1], [0, 0, 1, 1], [], []>} : vector<2x32xf32>, vector<32x32xf32>, vector<2x32xf32> -> vector<2x32xf32>
    %c0_62 = arith.constant 0 : index
    %c0_63 = arith.constant 0 : index
    %138 = vector.load %arg16[%c0_62, %c0_63] : memref<1x32xf32, #tpu.memory_space<vmem>>, vector<1x32xf32>
    %139 = vector.broadcast %138 : vector<1x32xf32> to vector<2x32xf32>
    %140 = arith.addf %137, %139 : vector<2x32xf32>
    %cst_64 = arith.constant 0.000000e+00 : f32
    %141 = vector.broadcast %cst_64 : f32 to vector<2x32xf32>
    %142 = arith.maximumf %140, %141 : vector<2x32xf32>
    %c0_65 = arith.constant 0 : index
    %c0_66 = arith.constant 0 : index
    %143 = vector.load %arg17[%c0_65, %c0_66] : memref<32x3xf32, #tpu.memory_space<vmem>>, vector<32x3xf32>
    %cst_67 = arith.constant dense<0.000000e+00> : vector<2x3xf32>
    %144 = tpu.matmul %142, %143, %cst_67 {dimension_numbers = #tpu.dot_dimension_numbers<[1], [0], [0], [1], [0, 0, 1, 1], [], []>} : vector<2x32xf32>, vector<32x3xf32>, vector<2x3xf32> -> vector<2x3xf32>
    %c0_68 = arith.constant 0 : index
    %c0_69 = arith.constant 0 : index
    %145 = vector.load %arg18[%c0_68, %c0_69] : memref<1x3xf32, #tpu.memory_space<vmem>>, vector<1x3xf32>
    %146 = vector.broadcast %145 : vector<1x3xf32> to vector<2x3xf32>
    %147 = arith.addf %144, %146 : vector<2x3xf32>
    %c0_70 = arith.constant 0 : index
    %c0_71 = arith.constant 0 : index
    %148 = vector.load %arg19[%c0_70, %c0_71] : memref<2x3xf32, #tpu.memory_space<vmem>>, vector<2x3xf32>
    tpu.vector_store %arg19[%c0_70, %c0_71], %147 {strides = array<i32>} : memref<2x3xf32, #tpu.memory_space<vmem>>, vector<2x3xf32>,
    return
  }
}

</mosaic_0001>

<bundles_post_ra>
// kernel: tpu_custom_call.1
= control target key start
LH: loop header
LB: loop body
LE: loop exit
PB: predicated region body
PF: predicated region fallthrough
CT: control target
= control target key end

     0   :  { %s1324_s0 = inlined_call_operand.vmem [shape: f32[16,8], index: 0, kind: input, shape index: {}]   ;;  %s1325_s1 = inlined_call_operand.vmem [shape: f32[16,16], index: 1, kind: input, shape index: {}]   ;;  %s1326_s2 = inlined_call_operand.vmem [shape: f32[8,32], index: 2, kind: input, shape index: {}]   ;;  %s1327_s3 = inlined_call_operand.vmem [shape: f32[1,32], index: 3, kind: input, shape index: {}]   ;;  %s1328_s4 = inlined_call_operand.vmem [shape: f32[32,32], index: 4, kind: input, shape index: {}]   ;;  %s1329_s5 = inlined_call_operand.vmem [shape: f32[1,32], index: 5, kind: input, shape index: {}]   ;;  %s1330_s6 = inlined_call_operand.vmem [shape: f32[32,64], index: 6, kind: input, shape index: {}]   ;;  %s1331_s7 = inlined_call_operand.vmem [shape: f32[64,4], index: 7, kind: input, shape index: {}]   ;;  %s1332_s8 = inlined_call_operand.vmem [shape: f32[1,64], index: 8, kind: input, shape index: {}]   ;;  %s1333_s9 = inlined_call_operand.vmem [shape: f32[64,32], index: 9, kind: input, shape index: {}]   ;;  %s1334_s10 = inlined_call_operand.vmem [shape: f32[32,4], index: 10, kind: input, shape index: {}]   ;;  %s1335_s11 = inlined_call_operand.vmem [shape: f32[1,32], index: 11, kind: input, shape index: {}]   ;;  %s1336_s12 = inlined_call_operand.vmem [shape: f32[2,16], index: 12, kind: input, shape index: {}]   ;;  %s1337_s13 = inlined_call_operand.vmem [shape: f32[1,32], index: 13, kind: input, shape index: {}]   ;;  %s1338_s14 = inlined_call_operand.vmem [shape: f32[1,32], index: 14, kind: input, shape index: {}]   ;;  %s1339_s15 = inlined_call_operand.vmem [shape: f32[32,32], index: 15, kind: input, shape index: {}]   ;;  %s1340_s16 = inlined_call_operand.vmem [shape: f32[1,32], index: 16, kind: input, shape index: {}]   ;;  %s1341_s17 = inlined_call_operand.vmem [shape: f32[32,3], index: 17, kind: input, shape index: {}]   ;;  %s1342_s18 = inlined_call_operand.vmem [shape: f32[1,3], index: 18, kind: input, shape index: {}]   ;;  %s1343_s19 = inlined_call_operand.hbm [shape: f32[2,3], index: 19, kind: output, shape index: {}]  }
   0x1   :  { %1346 = sst [smem:[#allocation5_spill]] %s1324_s0 }
   0x2   :  { %1347 = sst [smem:[#allocation6_spill]] %s1325_s1 }
   0x3   :  { %1348 = sst [smem:[#allocation7_spill]] %s1326_s2 }
   0x4   :  { %1349 = sst [smem:[#allocation8_spill]] %s1327_s3 }
   0x5   :  { %1350 = sst [smem:[#allocation9_spill]] %s1338_s14 }
   0x6   :  { %s1351_s20 = sld [smem:[#allocation7_spill]]  ;;  %vm70_vm0 = vcmask 64512   ;;  %v105_v2 = vld [vmem:[%s1328_s4 + $0x18] sm:$0xff] }
   0x7   :  { %s1352_s14 = sld [smem:[#allocation5_spill]]  ;;  %129 = vmatpush.msra.mxu1 %v105_v2 }
   0xc   :  { %v65_v0 = vld [vmem:[%s1351_s20] sm:$0xff] }
   0xd   :  { %v63_v1 = vld [vmem:[%s1352_s14] sm:$0xff]  ;;  %92 = vmatpush.msra.mxu0 %v65_v0 }
   0xe   :  { %864 = vmatmul.msk.f32.vlgmr.msra.gmra.mxu0 %vm70_vm0, %v63_v1 }
   0xf   :  { %24 = vsyncpa [#allocation3], 0  ;;  %v64_v3 = vld [vmem:[%s1352_s14 + $0x8] sm:$0xff]  ;;  %v104_v4 = vld [vmem:[%s1328_s4 + $0x10] sm:$0xff]  ;;  %s1353_s21 = sld [smem:[#allocation8_spill]]  ;;  %vm110_vm1 = vcmask 261120  }
  0x10   :  { %130 = vmatpush.msra.mxu1 %v104_v4  ;;  %v103_v5 = vld [vmem:[%s1328_s4 + $0x8] sm:$0xff]  ;;  %v102_v6 = vld [vmem:[%s1328_s4] sm:$0xff]  ;;  %v149_v7 = vld [vmem:[%s1330_s6 + $0x18] sm:$0xff]  ;;  %v979_v33 = vmov 3   ;;  %vm187_vm2 = vcmask 523264   ;;  %v980_v36 = vmov 2  }
  0x11   :  { %168 = vmatpush.msra.mxu2 %v149_v7  ;;  %v148_v15 = vld [vmem:[%s1330_s6 + $0x10] sm:$0xff]  ;;  %v147_v16 = vld [vmem:[%s1330_s6 + $0x8] sm:$0xff]  ;;  %v146_v17 = vld [vmem:[%s1330_s6] sm:$0xff]  ;;  %896 = vset.pattern.permute.xlu1 %v979_v33  ;;  %s1354_s3 = sld [smem:[#allocation6_spill]]  ;;  %vm268_vm5 = vcmask 130048   ;;  %s982_s28 = smov 96  }
  0x12   :  { %131 = vmatpush.msra.mxu1 %v103_v5  ;;  %v186_v18 = vld [vmem:[%s1331_s7 + $0x38] sm:$0xff]  ;;  %v185_v19 = vld [vmem:[%s1331_s7 + $0x30] sm:$0xff]  ;;  %v184_v20 = vld [vmem:[%s1331_s7 + $0x28] sm:$0xff]  ;;  %897 = vset.pattern.permute.xlu0 %v980_v36  ;;  %s983_s24 = smov 32   ;;  %s986_s1 = smov [#allocation2]   ;;  %vm846_vm6 = vcmask 17408  }
  0x13   :  { %169 = vmatpush.msra.mxu2 %v148_v15  ;;  %202 = vmatpush.msra.mxu3 %v186_v18  ;;  %v183_v21 = vld [vmem:[%s1331_s7 + $0x20] sm:$0xff]  ;;  %v182_v22 = vld [vmem:[%s1331_s7 + $0x18] sm:$0xff]  ;;  %v181_v23 = vld [vmem:[%s1331_s7 + $0x10] sm:$0xff]  ;;  %s853_s22 = sshll.u32 %s986_s1, 4  ;;  %s854_s22 = int_to_ptr.vmem [resolvable:$true] %s853_s22 }
  0x14   :  { %132 = vmatpush.msra.mxu1 %v102_v6  ;;  %v180_v24 = vld [vmem:[%s1331_s7 + $0x8] sm:$0xff]  ;;  %v914_v25 = vld [vmem:[%s1329_s5] ss:$0 sm:$0xff]  ;;  %s981_s5 = smov 127  }
  0x15   :  { %v913_v8 = vld [vmem:[%s1353_s21] ss:$0 sm:$0xff]  ;;  %170 = vmatpush.msra.mxu2 %v147_v16  ;;  %203 = vmatpush.msra.mxu3 %v185_v19 }
  0x16   :  { %865 = vmatmul.msk.f32.gmra.mxu0 %vm70_vm0, %v64_v3  ;;  %v179_v32 = vld [vmem:[%s1331_s7] sm:$0xff] }
  0x17   :  { %171 = vmatpush.msra.mxu2 %v146_v17  ;;  %204 = vmatpush.msra.mxu3 %v184_v20  ;;  %v1173_v49 = vld [vmem:[%s1354_s3 + $0x8] sm:$0xff]  ;;  %v1178_v50 = vld [vmem:[%s1354_s3] sm:$0xff] }
  0x18   :  { %vm145_vm3 = vcmp.gt.f32.partialorder %v1173_v49, 0.0  ;;  %vm144_vm4 = vcmp.gt.f32.partialorder %v1178_v50, 0.0 }
  0x19   :  { %205 = vmatpush.msra.mxu3 %v183_v21 }
  0x1b   :  { %206 = vmatpush.msra.mxu3 %v182_v22 }
  0x1d   :  { %207 = vmatpush.msra.mxu3 %v181_v23 }
  0x1f   :  { %208 = vmatpush.msra.mxu3 %v180_v24 }
  0x21   :  { %209 = vmatpush.msra.mxu3 %v179_v32 }
  0x8b   :  { %v94_v9 = vpop.f32.mrf.mxu0 }
  0x8c   :  { %v95_v10 = vadd.f32 %v913_v8, %v94_v9 }
  0x8e   :  { %v100_v11 = vmax.f32 %v95_v10, 0.0 }
  0x90   :  { %866 = vmatmul.msk.f32.vlgmr.msra.gmra.mxu1 %vm110_vm1, %v100_v11 }
  0x93   :  { %v97_v12 = vpop.f32.mrf.mxu0 }
  0x94   :  { %v98_v13 = vadd.f32 %v913_v8, %v97_v12 }
  0x96   :  { %v101_v14 = vmax.f32 %v98_v13, 0.0 }
  0x98   :  { %867 = vmatmul.msk.f32.gmra.mxu1 %vm110_vm1, %v101_v14 }
 0x10d   :  { %v134_v26 = vpop.f32.mrf.mxu1 }
 0x10e   :  { %v135_v27 = vadd.f32 %v914_v25, %v134_v26 }
 0x110   :  { %v140_v28 = vmax.f32 %v135_v27, 0.0 }
 0x112   :  { %868 = vmatmul.msk.f32.vlgmr.msra.gmra.mxu2 %vm110_vm1, %v140_v28 }
 0x115   :  { %v137_v29 = vpop.f32.mrf.mxu1 }
 0x116   :  { %v138_v30 = vadd.f32 %v914_v25, %v137_v29 }
 0x118   :  { %v141_v31 = vmax.f32 %v138_v30, 0.0 }
 0x11a   :  { %869 = vmatmul.msk.f32.gmra.mxu2 %vm110_vm1, %v141_v31 }
 0x195   :  { %v1155_v34 = vpop.f32.mrf.mxu2 }
 0x196   :  { %870 = vmatmul.msk.f32.vlgmr.msra.gmra.mxu3 %vm187_vm2, %v1155_v34 }
 0x19d   :  { %v1159_v35 = vpop.f32.mrf.mxu2 }
 0x19e   :  { %871 = vmatmul.msk.f32.gmra.mxu3 %vm187_vm2, %v1159_v35  ;;  %311 = vmatpush.msrb.mxu0 %v1159_v35  ;;  %v899_v7 = vpack.i.bf16 %v1155_v34, %v1159_v35 }
 0x1a0   :  { %312 = vmatpush.msrb.mxu0 %v1155_v34 }
 0x219   :  { %v211_v37 = vpop.f32.mrf.mxu3 }
 0x21a   :  { %359 = vperm.xlu1 %896, %v211_v37   ;;  %320 = vrot.lane.b32.xlu0 %v211_v37, %s981_s5 }
 0x221   :  { %v214_v38 = vpop.f32.mrf.mxu3 }
 0x222   :  { %251 = vperm.xlu0 %897, %v211_v37   ;;  %363 = vperm.xlu1 %896, %v214_v38  }
 0x22a   :  { %898 = vset.pattern.permute.xlu1 %v980_v36  ;;  %322 = vrot.lane.b32.xlu0 %v214_v38, %s981_s5 }
 0x22b   :  { %256 = vperm.xlu1 %898, %v214_v38  }
 0x233   :  { %905 = vset.pattern.permute.xlu1 %v979_v33 }
 0x24c   :  { %217 = vxpose.xlu0.b32.start [1/2] (short) (narrow) %v211_v37, 8 }
 0x254   :  { %218 = vxpose.xlu0.b32.end [2/2] (short) (narrow) %v214_v38, 8 }
 0x28c   :  { %v321_v39 = vpop.permute.xlu0 %320  ;;  %v360_v42 = vpop.permute.xlu1 %359 }
 0x28d   :  { %326 = vxpose.xlu2.b32.start [1/2] (short) (narrow) %v321_v39, 8 }
 0x294   :  { %v252_v40 = vpop.permute.xlu0 %251  ;;  %v364_v43 = vpop.permute.xlu1 %363 }
 0x29c   :  { %v323_v41 = vpop.permute.xlu0 %322 }
 0x29d   :  { %327 = vxpose.xlu2.b32.end [2/2] (short) (narrow) %v323_v41, 8  ;;  %v257_v46 = vpop.permute.xlu1 %256 }
 0x2f0   :  { %v233_v44 = vpop.trf.xlu0 }
 0x2f1   :  { %v259_v45 = vperm.slane %v233_v44, 0 }
 0x2f3   :  { %v260_v47 = vadd.f32 %v259_v45, %v252_v40  ;;  %v261_v48 = vadd.f32 %v259_v45, %v257_v46  ;;  %v455_v45 = vld [vmem:[%s1333_s9 + $0x38] sm:$0xff]  ;;  %v454_v46 = vld [vmem:[%s1333_s9 + $0x30] sm:$0xff] }
 0x2f4   :  { %470 = vmatpush.msrb.mxu2 %v455_v45 }
 0x2f5   :  { %v262_v51 = vmul.f32 0.2, %v260_v47  ;;  %v263_v52 = vmul.f32 0.2, %v261_v48 }
 0x2f6   :  { %471 = vmatpush.msrb.mxu2 %v454_v46 }
 0x2f7   :  { %v265_v53 = vmax.f32 %v261_v48, %v263_v52  ;;  %v264_v54 = vmax.f32 %v260_v47, %v262_v51  ;;  %v453_v47 = vld [vmem:[%s1333_s9 + $0x28] sm:$0xff]  ;;  %v452_v48 = vld [vmem:[%s1333_s9 + $0x20] sm:$0xff]  ;;  %v451_v51 = vld [vmem:[%s1333_s9 + $0x18] sm:$0xff] }
 0x2f8   :  { %472 = vmatpush.msrb.mxu2 %v453_v47  ;;  %v450_v52 = vld [vmem:[%s1333_s9 + $0x10] sm:$0xff] }
 0x2f9   :  { %v267_v55 = vsel %vm145_vm3, %v265_v53, -1e+30  ;;  %v266_v56 = vsel %vm144_vm4, %v264_v54, -1e+30 }
 0x2fa   :  { %v272_v57 = vsel %vm268_vm5, %v267_v55, -inf  ;;  %v269_v58 = vsel %vm268_vm5, %v266_v56, -inf  ;;  %473 = vmatpush.msrb.mxu2 %v452_v48 }
 0x2fb   :  { %273 = vmax.xlane.f32.xlu0 %v272_v57  ;;  %270 = vmax.xlane.f32.xlu1 %v269_v58  ;;  %v915_v57 = vld [vmem:[%s1332_s8] ss:$0 sm:$0xff]  ;;  %s1355_s8 = sld [smem:[#allocation9_spill]] }
 0x2fc   :  { %474 = vmatpush.msrb.mxu2 %v451_v51 }
 0x2fe   :  { %475 = vmatpush.msrb.mxu2 %v450_v52 }
 0x2ff   :  { %904 = vset.pattern.permute.xlu2 %v979_v33 }
 0x32e   :  { %v342_v59 = vpop.trf.xlu2 }
 0x32f   :  { %v366_v60 = vperm.slane %v342_v59, 0 }
 0x331   :  { %v367_v61 = vadd.f32 %v366_v60, %v360_v42  ;;  %v368_v62 = vadd.f32 %v366_v60, %v364_v43 }
 0x333   :  { %v369_v63 = vmul.f32 0.2, %v367_v61  ;;  %v370_v0 = vmul.f32 0.2, %v368_v62 }
 0x335   :  { %v372_v1 = vmax.f32 %v368_v62, %v370_v0  ;;  %v371_v2 = vmax.f32 %v367_v61, %v369_v63  ;;  %v488_v62 = vld [vmem:[%s1334_s10 + $0x18] sm:$0xff]  ;;  %v487_v63 = vld [vmem:[%s1334_s10 + $0x10] sm:$0xff]  ;;  %v486_v0 = vld [vmem:[%s1334_s10 + $0x8] sm:$0xff] }
 0x336   :  { %507 = vmatpush.msrb.mxu3 %v488_v62 }
 0x337   :  { %v374_v3 = vsel %vm145_vm3, %v372_v1, -1e+30  ;;  %v373_v4 = vsel %vm144_vm4, %v371_v2, -1e+30 }
 0x338   :  { %v378_v5 = vsel %vm268_vm5, %v374_v3, -inf  ;;  %v375_v6 = vsel %vm268_vm5, %v373_v4, -inf  ;;  %508 = vmatpush.msrb.mxu3 %v487_v63 }
 0x339   :  { %379 = vmax.xlane.f32.xlu1 %v378_v5  ;;  %376 = vmax.xlane.f32.xlu2 %v375_v6  ;;  %v485_v5 = vld [vmem:[%s1334_s10] sm:$0xff]  ;;  %s984_s10 = smov 112  }
 0x33a   :  { %509 = vmatpush.msrb.mxu3 %v486_v0 }
 0x33c   :  { %510 = vmatpush.msrb.mxu3 %v485_v5 }
 0x352   :  { %900 = vrot.lane.b32.xlu1 %v899_v7, %s982_s28 }
 0x36e   :  { %v271_v8 = vpop.xlane.xlu1 %270  ;;  %v274_v9 = vpop.xlane.xlu0 %273 }
 0x36f   :  { %v275_v10 = vsub.f32 %v266_v56, %v271_v8  ;;  %v276_v12 = vsub.f32 %v267_v55, %v274_v9  ;;  %v449_v55 = vld [vmem:[%s1333_s9 + $0x8] sm:$0xff]  ;;  %v448_v56 = vld [vmem:[%s1333_s9] sm:$0xff] }
 0x370   :  { %476 = vmatpush.msrb.mxu2 %v449_v55 }
 0x371   :  { %v277_v11 = vmul.f32 1.442695, %v275_v10  ;;  %v279_v13 = vmul.f32 1.442695, %v276_v12 }
 0x372   :  { %477 = vmatpush.msrb.mxu2 %v448_v56 }
 0x373   :  { %921 = vpow2.f32 %v277_v11 }
 0x374   :  { %923 = vpow2.f32 %v279_v13 }
 0x379   :  { %v922_v14 = vpop.eup %921 }
 0x37a   :  { %v281_v15 = vsel %vm268_vm5, %v922_v14, 0.0  ;;  %v924_v16 = vpop.eup %923 }
 0x37b   :  { %282 = vadd.xlane.f32.xlu2 %v281_v15  ;;  %v284_v17 = vsel %vm268_vm5, %v924_v16, 0.0 }
 0x383   :  { %285 = vadd.xlane.f32.xlu2 %v284_v17 }
 0x3ac   :  { %v377_v18 = vpop.xlane.xlu2 %376  ;;  %v380_v19 = vpop.xlane.xlu1 %379 }
 0x3ad   :  { %v381_v20 = vsub.f32 %v373_v4, %v377_v18  ;;  %v382_v22 = vsub.f32 %v374_v3, %v380_v19 }
 0x3af   :  { %v383_v21 = vmul.f32 1.442695, %v381_v20  ;;  %v385_v23 = vmul.f32 1.442695, %v382_v22 }
 0x3b1   :  { %925 = vpow2.f32 %v383_v21 }
 0x3b2   :  { %927 = vpow2.f32 %v385_v23 }
 0x3b7   :  { %v926_v24 = vpop.eup %925 }
 0x3b8   :  { %v387_v25 = vsel %vm268_vm5, %v926_v24, 0.0  ;;  %v928_v26 = vpop.eup %927 }
 0x3b9   :  { %388 = vadd.xlane.f32.xlu1 %v387_v25  ;;  %v390_v27 = vsel %vm268_vm5, %v928_v26, 0.0 }
 0x3c1   :  { %391 = vadd.xlane.f32.xlu1 %v390_v27 }
 0x3c4   :  { %v901_v28 = vpop.permute.xlu1 %900 }
 0x3c5   :  { %v902_v29 = vunpack.i.l.bf16 %v901_v28  ;;  %v903_v30 = vunpack.i.h.bf16 %v901_v28 }
 0x3c7   :  { %423 = vmatpush.msrb.mxu1 %v902_v29 }
 0x3c9   :  { %424 = vmatpush.msrb.mxu1 %v903_v30 }
 0x3ee   :  { %v283_v31 = vpop.xlane.xlu2 %282 }
 0x3ef   :  { %929 = vrcp.f32 %v283_v31 }
 0x3f5   :  { %v930_v32 = vpop.eup %929 }
 0x3f6   :  { %v286_v34 = vpop.xlane.xlu2 %285  ;;  %v289_v35 = vmul.f32 %v930_v32, %v922_v14 }
 0x3f7   :  { %931 = vrcp.f32 %v286_v34 }
 0x3f8   :  { %872 = vmatmul.msk.f32.vlgmr.msrb.gmra.mxu0 %vm268_vm5, %v289_v35 }
 0x3fd   :  { %v932_v37 = vpop.eup %931 }
 0x3fe   :  { %v290_v38 = vmul.f32 %v932_v37, %v924_v16 }
 0x400   :  { %873 = vmatmul.msk.f32.gmra.mxu0 %vm268_vm5, %v290_v38 }
 0x42c   :  { %v389_v39 = vpop.xlane.xlu1 %388 }
 0x42d   :  { %933 = vrcp.f32 %v389_v39 }
 0x433   :  { %v934_v40 = vpop.eup %933 }
 0x434   :  { %v392_v41 = vpop.xlane.xlu1 %391  ;;  %v395_v42 = vmul.f32 %v934_v40, %v926_v24 }
 0x435   :  { %935 = vrcp.f32 %v392_v41 }
 0x436   :  { %874 = vmatmul.msk.f32.vlgmr.msrb.gmra.mxu1 %vm268_vm5, %v395_v42 }
 0x43b   :  { %v936_v43 = vpop.eup %935 }
 0x43c   :  { %v396_v44 = vmul.f32 %v936_v43, %v928_v26 }
 0x43e   :  { %875 = vmatmul.msk.f32.gmra.mxu1 %vm268_vm5, %v396_v44 }
 0x475   :  { %v314_v58 = vpop.f32.mrf.mxu0 }
 0x47d   :  { %v317_v1 = vpop.f32.mrf.mxu0 }
 0x4b3   :  { %v426_v53 = vpop.f32.mrf.mxu1 }
 0x4b4   :  { %434 = vrot.lane.b32.xlu2 %v426_v53, %s983_s24 }
 0x4bb   :  { %v429_v54 = vpop.f32.mrf.mxu1 }
 0x4bc   :  { %436 = vrot.lane.b32.xlu1 %v429_v54, %s983_s24 }
 0x50e   :  { %v435_v59 = vpop.permute.xlu2 %434 }
 0x50f   :  { %v440_v60 = vsel %vm110_vm1, %v314_v58, %v435_v59 }
 0x510   :  { %v446_v61 = vadd.f32 %v915_v57, %v440_v60 }
 0x512   :  { %876 = vmatmul.msk.f32.vlgmr.msrb.gmra.mxu2 %vm187_vm2, %v446_v61 }
 0x52e   :  { %v437_v2 = vpop.permute.xlu1 %436 }
 0x52f   :  { %v441_v3 = vsel %vm110_vm1, %v317_v1, %v437_v2 }
 0x530   :  { %v447_v4 = vadd.f32 %v915_v57, %v441_v3 }
 0x532   :  { %877 = vmatmul.msk.f32.gmra.mxu2 %vm187_vm2, %v447_v4 }
 0x595   :  { %v479_v6 = vpop.f32.mrf.mxu2 }
 0x596   :  { %878 = vmatmul.msk.f32.vlgmr.msrb.gmra.mxu3 %vm110_vm1, %v479_v6 }
 0x5b5   :  { %v482_v7 = vpop.f32.mrf.mxu2 }
 0x5b6   :  { %879 = vmatmul.msk.f32.gmra.mxu3 %vm110_vm1, %v482_v7  ;;  %611 = vmatpush.msra.mxu0 %v482_v7  ;;  %v907_v40 = vpack.i.bf16 %v479_v6, %v482_v7 }
 0x5b8   :  { %612 = vmatpush.msra.mxu0 %v479_v6 }
 0x619   :  { %v512_v8 = vpop.f32.mrf.mxu3 }
 0x61a   :  { %552 = vperm.xlu0 %897, %v512_v8   ;;  %620 = vrot.lane.b32.xlu2 %v512_v8, %s981_s5 }
 0x622   :  { %659 = vperm.xlu2 %904, %v512_v8   ;;  %912 = vset.pattern.permute.xlu0 %v979_v33 }
 0x639   :  { %v515_v9 = vpop.f32.mrf.mxu3 }
 0x63a   :  { %622 = vrot.lane.b32.xlu1 %v515_v9, %s981_s5  ;;  %s985_s5 = smov 16  }
 0x642   :  { %663 = vperm.xlu1 %905, %v515_v9  }
 0x64a   :  { %906 = vset.pattern.permute.xlu1 %v980_v36 }
 0x64b   :  { %557 = vperm.xlu1 %906, %v515_v9  }
 0x674   :  { %v621_v10 = vpop.permute.xlu2 %620 }
 0x675   :  { %626 = vxpose.xlu2.b32.start [1/2] (short) (narrow) %v621_v10, 8 }
 0x67c   :  { %v660_v12 = vpop.permute.xlu2 %659 }
 0x68c   :  { %v553_v26 = vpop.permute.xlu0 %552 }
 0x6ac   :  { %v623_v11 = vpop.permute.xlu1 %622 }
 0x6ad   :  { %627 = vxpose.xlu2.b32.end [2/2] (short) (narrow) %v623_v11, 8 }
 0x6b4   :  { %v664_v15 = vpop.permute.xlu1 %663 }
 0x6b5   :  { %518 = vxpose.xlu2.b32.start [1/2] (short) (narrow) %v512_v8, 8 }
 0x6bd   :  { %519 = vxpose.xlu2.b32.end [2/2] (short) (narrow) %v515_v9, 8  ;;  %v558_v27 = vpop.permute.xlu1 %557 }
 0x73e   :  { %v642_v13 = vpop.trf.xlu2 }
 0x73f   :  { %v666_v14 = vperm.slane %v642_v13, 0 }
 0x741   :  { %v667_v16 = vadd.f32 %v666_v14, %v660_v12  ;;  %v668_v17 = vadd.f32 %v666_v14, %v664_v15  ;;  %v916_v15 = vld [vmem:[%s1335_s11] ss:$0 sm:$0xff] }
 0x743   :  { %v669_v33 = vmul.f32 0.2, %v667_v16  ;;  %v670_v18 = vmul.f32 0.2, %v668_v17 }
 0x745   :  { %v671_v19 = vmax.f32 %v667_v16, %v669_v33  ;;  %v672_v20 = vmax.f32 %v668_v17, %v670_v18 }
 0x747   :  { %v673_v36 = vsel %vm144_vm4, %v671_v19, -1e+30  ;;  %v674_v21 = vsel %vm145_vm3, %v672_v20, -1e+30 }
 0x748   :  { %v675_v22 = vsel %vm268_vm5, %v673_v36, -inf  ;;  %v678_v23 = vsel %vm268_vm5, %v674_v21, -inf }
 0x749   :  { %676 = vmax.xlane.f32.xlu1 %v675_v22  ;;  %679 = vmax.xlane.f32.xlu0 %v678_v23  ;;  %v786_v22 = vld [vmem:[%s1339_s15 + $0x18] sm:$0xff]  ;;  %v785_v23 = vld [vmem:[%s1339_s15 + $0x10] sm:$0xff] }
 0x74e   :  { %v534_v24 = vpop.trf.xlu2 }
 0x74f   :  { %v560_v25 = vperm.slane %v534_v24, 0  ;;  %v784_v24 = vld [vmem:[%s1339_s15 + $0x8] sm:$0xff] }
 0x751   :  { %v561_v28 = vadd.f32 %v560_v25, %v553_v26  ;;  %v562_v29 = vadd.f32 %v560_v25, %v558_v27  ;;  %v783_v25 = vld [vmem:[%s1339_s15] sm:$0xff]  ;;  %v818_v26 = vld [vmem:[%s1341_s17 + $0x18] sm:$0xff]  ;;  %v817_v27 = vld [vmem:[%s1341_s17 + $0x10] sm:$0xff] }
 0x752   :  { %838 = vmatpush.msra.mxu3 %v818_v26 }
 0x753   :  { %v563_v30 = vmul.f32 0.2, %v561_v28  ;;  %v564_v31 = vmul.f32 0.2, %v562_v29 }
 0x754   :  { %839 = vmatpush.msra.mxu3 %v817_v27 }
 0x755   :  { %v565_v32 = vmax.f32 %v561_v28, %v563_v30  ;;  %v566_v34 = vmax.f32 %v562_v29, %v564_v31  ;;  %v816_v28 = vld [vmem:[%s1341_s17 + $0x8] sm:$0xff]  ;;  %v917_v29 = vld [vmem:[%s1337_s13] ss:$0 sm:$0xff] }
 0x756   :  { %840 = vmatpush.msra.mxu3 %v816_v28  ;;  %v918_v30 = vld [vmem:[%s1355_s8] ss:$0 sm:$0xff] }
 0x757   :  { %v567_v35 = vsel %vm144_vm4, %v565_v32, -1e+30  ;;  %v568_v37 = vsel %vm145_vm3, %v566_v34, -1e+30 }
 0x758   :  { %v569_v38 = vsel %vm268_vm5, %v567_v35, -inf  ;;  %v572_v39 = vsel %vm268_vm5, %v568_v37, -inf }
 0x759   :  { %570 = vmax.xlane.f32.xlu1 %v569_v38  ;;  %573 = vmax.xlane.f32.xlu2 %v572_v39  ;;  %v919_v38 = vld [vmem:[%s1340_s16] ss:$0 sm:$0xff] }
 0x75d   :  { %908 = vrot.lane.b32.xlu0 %v907_v40, %s984_s10 }
 0x7bc   :  { %v677_v41 = vpop.xlane.xlu1 %676  ;;  %v680_v42 = vpop.xlane.xlu0 %679 }
 0x7bd   :  { %v681_v43 = vsub.f32 %v673_v36, %v677_v41  ;;  %v682_v45 = vsub.f32 %v674_v21, %v680_v42  ;;  %v748_v21 = vld [vmem:[%s1336_s12] sm:$0x3] }
 0x7be   :  { %v920_v42 = vld [vmem:[%s1342_s18] ss:$0 sm:$0xff] }
 0x7bf   :  { %v683_v44 = vmul.f32 1.442695, %v681_v43  ;;  %v685_v50 = vmul.f32 1.442695, %v682_v45 }
 0x7c1   :  { %937 = vpow2.f32 %v683_v44 }
 0x7c2   :  { %939 = vpow2.f32 %v685_v50 }
 0x7c7   :  { %v938_v46 = vpop.eup %937 }
 0x7c8   :  { %v687_v49 = vsel %vm268_vm5, %v938_v46, 0.0  ;;  %v940_v53 = vpop.eup %939 }
 0x7c9   :  { %688 = vadd.xlane.f32.xlu1 %v687_v49  ;;  %v690_v58 = vsel %vm268_vm5, %v940_v53, 0.0 }
 0x7cc   :  { %v574_v47 = vpop.xlane.xlu2 %573  ;;  %v571_v48 = vpop.xlane.xlu1 %570 }
 0x7cd   :  { %v576_v51 = vsub.f32 %v568_v37, %v574_v47  ;;  %v575_v52 = vsub.f32 %v567_v35, %v571_v48  ;;  %v815_v37 = vld [vmem:[%s1341_s17] sm:$0xff]  ;;  %s855_s17 = sshll.u32 %s1343_s19, 4  ;;  %s856_s17 = int_to_ptr.hbm [resolvable:$true] %s855_s17 }
 0x7ce   :  { %841 = vmatpush.msra.mxu3 %v815_v37 }
 0x7cf   :  { %v579_v54 = vmul.f32 1.442695, %v576_v51  ;;  %v577_v55 = vmul.f32 1.442695, %v575_v52  ;;  %v909_v56 = vpop.permute.xlu0 %908 }
 0x7d0   :  { %v910_v57 = vunpack.i.l.bf16 %v909_v56  ;;  %v911_v59 = vunpack.i.h.bf16 %v909_v56 }
 0x7d1   :  { %941 = vpow2.f32 %v579_v54  ;;  %691 = vadd.xlane.f32.xlu1 %v690_v58 }
 0x7d2   :  { %943 = vpow2.f32 %v577_v55  ;;  %723 = vmatpush.msra.mxu1 %v910_v57 }
 0x7d4   :  { %724 = vmatpush.msra.mxu1 %v911_v59 }
 0x7d7   :  { %v942_v60 = vpop.eup %941 }
 0x7d8   :  { %v944_v61 = vpop.eup %943  ;;  %v584_v62 = vsel %vm268_vm5, %v942_v60, 0.0 }
 0x7d9   :  { %585 = vadd.xlane.f32.xlu0 %v584_v62  ;;  %v581_v63 = vsel %vm268_vm5, %v944_v61, 0.0 }
 0x7da   :  { %582 = vadd.xlane.f32.xlu1 %v581_v63 }
 0x83c   :  { %v689_v0 = vpop.xlane.xlu1 %688 }
 0x83d   :  { %945 = vrcp.f32 %v689_v0 }
 0x843   :  { %v946_v1 = vpop.eup %945 }
 0x844   :  { %v695_v2 = vmul.f32 %v946_v1, %v938_v46  ;;  %v692_v3 = vpop.xlane.xlu1 %691 }
 0x845   :  { %947 = vrcp.f32 %v692_v3 }
 0x846   :  { %882 = vmatmul.msk.f32.vlgmr.msra.gmra.mxu1 %vm268_vm5, %v695_v2 }
 0x84b   :  { %v948_v4 = vpop.eup %947 }
 0x84c   :  { %v696_v6 = vmul.f32 %v948_v4, %v940_v53  ;;  %v586_v7 = vpop.xlane.xlu0 %585 }
 0x84d   :  { %v583_v5 = vpop.xlane.xlu1 %582 }
 0x84e   :  { %949 = vrcp.f32 %v583_v5  ;;  %883 = vmatmul.msk.f32.gmra.mxu1 %vm268_vm5, %v696_v6 }
 0x84f   :  { %951 = vrcp.f32 %v586_v7 }
 0x854   :  { %v950_v8 = vpop.eup %949 }
 0x855   :  { %v589_v9 = vmul.f32 %v950_v8, %v944_v61  ;;  %v952_v10 = vpop.eup %951 }
 0x856   :  { %v590_v11 = vmul.f32 %v952_v10, %v942_v60 }
 0x857   :  { %880 = vmatmul.msk.f32.vlgmr.msra.gmra.mxu0 %vm268_vm5, %v589_v9 }
 0x85f   :  { %881 = vmatmul.msk.f32.gmra.mxu0 %vm268_vm5, %v590_v11 }
 0x8c3   :  { %v726_v12 = vpop.f32.mrf.mxu1 }
 0x8cb   :  { %v729_v13 = vpop.f32.mrf.mxu1 }
 0x8cc   :  { %736 = vrot.lane.b32.xlu1 %v729_v13, %s985_s5 }
 0x8d4   :  { %734 = vrot.lane.b32.xlu1 %v726_v12, %s985_s5  ;;  %v614_v14 = vpop.f32.mrf.mxu0 }
 0x8dc   :  { %v617_v16 = vpop.f32.mrf.mxu0 }
 0x93e   :  { %v737_v17 = vpop.permute.xlu1 %736 }
 0x93f   :  { %v741_v33 = vsel %vm268_vm5, %v617_v16, %v737_v17 }
 0x940   :  { %v747_v18 = vadd.f32 %v916_v15, %v741_v33 }
 0x942   :  { %766 = vmatpush.msra.mxu2 %v747_v18 }
 0x946   :  { %v735_v19 = vpop.permute.xlu1 %734 }
 0x947   :  { %v740_v20 = vsel %vm268_vm5, %v614_v14, %v735_v19 }
 0x948   :  { %v746_v36 = vadd.f32 %v916_v15, %v740_v20 }
 0x94a   :  { %767 = vmatpush.msra.mxu2 %v746_v36 }
 0x94b   :  { %884 = vmatmul.msk.f32.vlgmr.msra.gmra.mxu2 %vm268_vm5, %v748_v21 }
 0x94c   :  { %806 = vmatpush.msrb.mxu2 %v786_v22 }
 0x94e   :  { %807 = vmatpush.msrb.mxu2 %v785_v23 }
 0x950   :  { %808 = vmatpush.msrb.mxu2 %v784_v24 }
 0x952   :  { %809 = vmatpush.msrb.mxu2 %v783_v25 }
 0x9ce   :  { %v769_v31 = vpop.f32.mrf.mxu2 }
 0x9cf   :  { %v776_v32 = vmul.f32 %v917_v29, %v769_v31 }
 0x9d1   :  { %v781_v34 = vadd.f32 %v918_v30, %v776_v32 }
 0x9d3   :  { %v782_v35 = vmax.f32 %v781_v34, 0.0 }
 0x9d5   :  { %885 = vmatmul.msk.f32.vlgmr.msrb.gmra.mxu2 %vm110_vm1, %v782_v35 }
 0xa58   :  { %v811_v39 = vpop.f32.mrf.mxu2 }
 0xa59   :  { %v812_v40 = vadd.f32 %v919_v38, %v811_v39 }
 0xa5b   :  { %v814_v41 = vmax.f32 %v812_v40, 0.0 }
 0xa5d   :  { %886 = vmatmul.msk.f32.vlgmr.msra.gmra.mxu3 %vm110_vm1, %v814_v41 }
 0xae0   :  { %v843_v43 = vpop.f32.mrf.mxu3 }
 0xae1   :  { %v844_v44 = vadd.f32 %v920_v42, %v843_v43 }
 0xae3   :  { %847 = vst.msk [vmem:[#allocation2] sm:$0x3] %vm846_vm6, %v844_v44 }
 0xae4   :  { %858 = dma.vmem_to_hbm [thread:$0]  %s854_s22, 32, %s856_s17, [#allocation3]  }
 0xae5   :  { %977 = dma.done.wait [#allocation3], 32  }
 0xae6   :  { %978 = vsyncadd [#allocation3], 4294967264 }
 0xae7   :  { %863 = vsyncpa [#allocation3], 1 }

</bundles_post_ra>
